<compile_context>
chip_gen: v7x
topology: tpu7x:2x2x1
jax: 0.10.0
libtpu: 0.0.40
codegen_flags: <defaults>
</compile_context>

<pallas_src>
import functools

import jax
import jax.numpy as jnp
from jax.experimental import pallas as pl
from jax.experimental.pallas import tpu as pltpu


def _supcon_kernel(q_ref, ft_ref, labq_ref, labc_ref, out_ref, *,
                   inv_temperature: float, half: int):
    i = pl.program_id(0)
    tq = q_ref.shape[0]
    B = ft_ref.shape[1]
    op_dtype = ft_ref.dtype

    inv_t = jnp.float32(inv_temperature)
    # Fold 1/temperature into the small (TQ, D) operand: O(TQ*D) multiply
    # instead of an O(TQ*B) multiply on the similarity tile.  (Scale in f32,
    # then cast back to the MXU operand dtype.)
    q_scaled = (q_ref[...].astype(jnp.float32) * inv_t).astype(op_dtype)

    # (TQ, B) similarity tile.  The contrast features were transposed ONCE in
    # the wrapper, so this is a canonical (TQ,D)x(D,B) matmul — the resident
    # RHS is consumed directly by the MXU, no per-step transpose.
    sim = jnp.dot(q_scaled, ft_ref[...], preferred_element_type=jnp.float32)

    # Masks built from 1-D iotas; comparisons broadcast to (TQ, B) booleans,
    # never materializing (TQ, B) int32 tiles.
    row = jax.lax.broadcasted_iota(jnp.int32, (tq, 1), 0) + i * tq   # (TQ, 1)
    col = jax.lax.broadcasted_iota(jnp.int32, (1, B), 1)             # (1, B)
    not_self = row != col                                            # logits_mask
    cross_view = (row < half) != (col < half)                        # temp_mask
    same_label = labq_ref[...] == labc_ref[...]                      # (TQ,1)==(1,B)
    pos_mask = same_label & cross_view                               # positives

    # Numerically stabilized log-softmax without materializing log_prob:
    #   mean_log_prob_pos = sum(mask*logits)/sum(mask) - log(sum(exp_logits))
    logits_max = jnp.max(sim, axis=1, keepdims=True)
    logits = sim - logits_max
    exp_sum = jnp.sum(jnp.where(not_self, jnp.exp(logits), 0.0),
                      axis=1, keepdims=True)
    pos_sum = jnp.sum(jnp.where(pos_mask, logits, 0.0),
                      axis=1, keepdims=True)
    pos_cnt = jnp.sum(jnp.where(pos_mask, 1.0, 0.0),
                      axis=1, keepdims=True)

    # Plain divide over only TQ values (negligible either way).  pos_cnt == 0
    # rows yield NaN, matching the PyTorch module exactly.
    mean_log_prob_pos = pos_sum / pos_cnt - jnp.log(exp_sum)
    out_ref[...] = -mean_log_prob_pos                                # (TQ, 1)
    # TODO(synk): for TQ that is a multiple of 128, a lane-dense (1, TQ) output
    # layout would avoid masked vst stores; modest win, skipped for robustness.


def supcon_loss(features, labels, temperature: float = 0.07, block_q=None,
                mxu_dtype=jnp.bfloat16):
    """features: (B, D), labels: (B,). Returns the scalar SupCon loss."""
    B, D = features.shape
    assert B % 2 == 0, "batch must hold two views: B = 2 * N"

    mxu_dtype = jnp.dtype(mxu_dtype)
    item = mxu_dtype.itemsize

    # VMEM budget from the actual chip (v5e/v6e: 128 MiB, v7x: 64 MiB), with
    # headroom left for Mosaic internal scratch.
    try:
        phys_vmem = int(pltpu.get_tpu_info().vmem_capacity_bytes)
    except Exception:  # pragma: no cover - conservative default
        phys_vmem = 64 * 1024 * 1024
    budget = int(phys_vmem * 0.85)

    def working_set(tq, contrast_bufs):
        return (contrast_bufs * B * D * item   # resident (D, B) contrast matrix
                + 2 * tq * D * item            # double-buffered anchor blocks
                + 8 * tq * B * 4               # live f32 (TQ, B) temporaries
                + 3 * tq * B                   # boolean mask tiles
                + 8 * (B + tq)                 # labels + per-row outputs
                + (2 << 20))                   # compiler scratch slack

    if block_q is None:
        # Largest row block that divides B and fits the VMEM budget; big blocks
        # amortize the ~0.35 us per-grid-step overhead and fill the MXU rows.
        cands = [t for t in (512, 256, 128, 64, 32, 16, 8) if B % t == 0]
        block_q = next((t for t in cands if working_set(t, 1) <= budget),
                       cands[-1] if cands else B)
    tq = int(block_q)
    if B % tq != 0:
        tq = B
    grid = (B // tq,)
    # TODO(synk): for very large B where even the smallest TQ exceeds the VMEM
    # budget, add a second ("arbitrary") grid axis over contrast columns with
    # flash-style online accumulation instead of a fully resident (D, B) RHS.

    # Labels stay integer (exact ==); passed both as a (B,1) column and a
    # lane-dense (1,B) row so the kernel never transposes them.
    lab_dtype = (jnp.float32 if jnp.issubdtype(labels.dtype, jnp.floating)
                 else jnp.int32)
    lab_rows = labels.reshape(B, 1).astype(lab_dtype)
    lab_cols = labels.reshape(1, B).astype(lab_dtype)

    # bf16 MXU operands by default (f32 accumulation + f32 elementwise inside
    # the kernel).  One-time HBM transpose so the resident contrast operand is
    # already the canonical (D, B) RHS.
    feats_op = features.astype(mxu_dtype)
    feats_t = feats_op.T

    kernel = functools.partial(_supcon_kernel,
                               inv_temperature=1.0 / float(temperature),
                               half=B // 2)

    def make_call(contrast_bufs):
        invariant_kwargs = (
            {"pipeline_mode": pl.Buffered(1)} if contrast_bufs == 1 else {})
        vmem_limit = int(min(max(working_set(tq, contrast_bufs), 16 << 20),
                             budget))
        return pl.pallas_call(
            kernel,
            out_shape=jax.ShapeDtypeStruct((B, 1), jnp.float32),
            grid=grid,
            in_specs=[
                pl.BlockSpec((tq, D), lambda i: (i, 0)),   # anchor row block
                pl.BlockSpec((D, B), lambda i: (0, 0),     # resident contrast^T
                             **invariant_kwargs),
                pl.BlockSpec((tq, 1), lambda i: (i, 0)),   # row labels
                pl.BlockSpec((1, B), lambda i: (0, 0),     # lane-dense col labels
                             **invariant_kwargs),
            ],
            out_specs=pl.BlockSpec((tq, 1), lambda i: (i, 0)),
            compiler_params=pltpu.CompilerParams(
                dimension_semantics=("parallel",),
                vmem_limit_bytes=vmem_limit),
        )

    try:
        # Grid-invariant inputs single-buffered: their block index never
        # changes, so double-buffering only doubles residency.
        per_row = make_call(1)(feats_op, feats_t, lab_rows, lab_cols)
    except Exception:
        # Fallback if this Pallas build rejects single-buffered specs.
        per_row = make_call(2)(feats_op, feats_t, lab_rows, lab_cols)

    return jnp.mean(per_row)


def _reference_supcon(features, labels, temperature=0.07):
    """Pure-JAX reference mirroring the PyTorch module, for sanity checking."""
    B = features.shape[0]
    half = B // 2
    lab = labels.reshape(B, 1)
    mask = (lab == lab.T).astype(jnp.float32)
    f32 = features.astype(jnp.float32)
    sim = (f32 @ f32.T) / temperature
    logits_mask = 1.0 - jnp.eye(B, dtype=jnp.float32)
    row = jnp.arange(B)[:, None]
    col = jnp.arange(B)[None, :]
    temp_mask = ((row < half) != (col < half)).astype(jnp.float32)
    mask = mask * temp_mask
    logits_max = jnp.max(sim, axis=1, keepdims=True)
    logits = sim - logits_max
    exp_logits = jnp.exp(logits) * logits_mask
    log_prob = logits - jnp.log(jnp.sum(exp_logits, axis=1, keepdims=True))
    mean_log_prob_pos = jnp.sum(mask * log_prob, axis=1) / jnp.sum(mask, axis=1)
    return jnp.mean(-mean_log_prob_pos)


if __name__ == "__main__":
    key = jax.random.PRNGKey(0)
    N, D = 8, 128                      # N samples, 2 views each -> batch B = 16
    B = 2 * N
    feats = jax.random.normal(key, (B, D), dtype=jnp.float32)
    feats = feats / jnp.linalg.norm(feats, axis=1, keepdims=True)
    # labels: two views of the same N samples concatenated
    labels = jnp.concatenate([jnp.arange(N), jnp.arange(N)]).astype(jnp.int32)

    ref = _reference_supcon(feats, labels, temperature=0.07)

    # f32 MXU-operand path — exact check (block_q=8 -> 2 grid steps, exercises
    # the row tiling).
    loss_f32 = supcon_loss(feats, labels, temperature=0.07, block_q=8,
                           mxu_dtype=jnp.float32)
    loss_f32 = jax.block_until_ready(loss_f32)
    assert jnp.allclose(loss_f32, ref, rtol=1e-4, atol=1e-4), (loss_f32, ref)

    # Default bf16 MXU-operand path (f32 accumulation / elementwise) — bf16
    # feature + folded 1/T rounding gives ~1e-2 relative logit error, so use a
    # loose absolute check.
    loss_bf16 = jax.block_until_ready(
        supcon_loss(feats, labels, temperature=0.07, block_q=8))
    assert bool(jnp.isfinite(loss_bf16)), loss_bf16
    assert abs(float(loss_bf16) - float(ref)) < 0.5, (loss_bf16, ref)

    # Auto block_q / VMEM-budgeted path (single grid step at this tiny B).
    loss_auto = jax.block_until_ready(
        supcon_loss(feats, labels, temperature=0.07, mxu_dtype=jnp.float32))
    assert jnp.allclose(loss_auto, ref, rtol=1e-4, atol=1e-4), (loss_auto, ref)

    print("KERNEL_OK")
</pallas_src>

<mosaic_0001>
module attributes {stable_mosaic.version = 11 : i64} {
  func.func @_supcon_kernel(%arg0: i32, %arg1: memref<8x128xf32, #tpu.memory_space<vmem>>, %arg2: memref<128x16xf32, #tpu.memory_space<vmem>>, %arg3: memref<8x1xi32, #tpu.memory_space<vmem>>, %arg4: memref<1x16xi32, #tpu.memory_space<vmem>>, %arg5: memref<8x1xf32, #tpu.memory_space<vmem>>) attributes {dimension_semantics = [#tpu.dimension_semantics<parallel>], iteration_bounds = array<i64: 2>, scalar_prefetch = 0 : i64, scratch_operands = 0 : i64, tpu.core_type = #tpu.core_type<tc>, window_params = [{transform_indices = @transform_0, window_bounds = array<i64: 8, 128>}, {pipeline_mode = #tpu.pipeline_mode<synchronous>, transform_indices = @transform_1, window_bounds = array<i64: 128, 16>}, {transform_indices = @transform_2, window_bounds = array<i64: 8, 1>}, {pipeline_mode = #tpu.pipeline_mode<synchronous>, transform_indices = @transform_3, window_bounds = array<i64: 1, 16>}, {transform_indices = @transform_4, window_bounds = array<i64: 8, 1>}]} {
    %c0 = arith.constant 0 : index
    %c0_0 = arith.constant 0 : index
    %0 = vector.load %arg1[%c0, %c0_0] : memref<8x128xf32, #tpu.memory_space<vmem>>, vector<8x128xf32>
    %cst = arith.constant 14.2857141 : f32
    %1 = vector.broadcast %cst : f32 to vector<8x128xf32>
    %2 = arith.mulf %0, %1 : vector<8x128xf32>
    %c0_1 = arith.constant 0 : index
    %c0_2 = arith.constant 0 : index
    %3 = vector.load %arg2[%c0_1, %c0_2] : memref<128x16xf32, #tpu.memory_space<vmem>>, vector<128x16xf32>
    %cst_3 = arith.constant dense<0.000000e+00> : vector<8x16xf32>
    %4 = tpu.matmul %2, %3, %cst_3 {dimension_numbers = #tpu.dot_dimension_numbers<[1], [0], [0], [1], [0, 0, 1, 1], [], []>} : vector<8x128xf32>, vector<128x16xf32>, vector<8x16xf32> -> vector<8x16xf32>
    %5 = tpu.iota {dimensions = array<i32: 0>} : vector<8x1xi32>
    %c8_i32 = arith.constant 8 : i32
    %6 = arith.muli %arg0, %c8_i32 : i32
    %7 = vector.broadcast %6 : i32 to vector<8x1xi32>
    %8 = arith.addi %5, %7 : vector<8x1xi32>
    %9 = tpu.iota {dimensions = array<i32: 1>} : vector<1x16xi32>
    %10 = vector.broadcast %8 : vector<8x1xi32> to vector<8x16xi32>
    %11 = vector.broadcast %9 : vector<1x16xi32> to vector<8x16xi32>
    %12 = arith.cmpi ne, %10, %11 : vector<8x16xi32>
    %c8_i32_4 = arith.constant 8 : i32
    %13 = vector.broadcast %c8_i32_4 : i32 to vector<8x1xi32>
    %14 = arith.cmpi slt, %8, %13 : vector<8x1xi32>
    %c8_i32_5 = arith.constant 8 : i32
    %15 = vector.broadcast %c8_i32_5 : i32 to vector<1x16xi32>
    %16 = arith.cmpi slt, %9, %15 : vector<1x16xi32>
    %17 = vector.broadcast %14 : vector<8x1xi1> to vector<8x16xi1>
    %18 = vector.broadcast %16 : vector<1x16xi1> to vector<8x16xi1>
    %19 = vector.broadcast %17 : vector<8x16xi1> to vector<8x16xi1>
    %20 = vector.broadcast %18 : vector<8x16xi1> to vector<8x16xi1>
    %21 = arith.xori %19, %20 : vector<8x16xi1>
    %c0_6 = arith.constant 0 : index
    %c0_7 = arith.constant 0 : index
    %22 = vector.load %arg3[%c0_6, %c0_7] : memref<8x1xi32, #tpu.memory_space<vmem>>, vector<8x1xi32>
    %c0_8 = arith.constant 0 : index
    %c0_9 = arith.constant 0 : index
    %23 = vector.load %arg4[%c0_8, %c0_9] : memref<1x16xi32, #tpu.memory_space<vmem>>, vector<1x16xi32>
    %24 = vector.broadcast %22 : vector<8x1xi32> to vector<8x16xi32>
    %25 = vector.broadcast %23 : vector<1x16xi32> to vector<8x16xi32>
    %26 = arith.cmpi eq, %24, %25 : vector<8x16xi32>
    %27 = arith.andi %26, %21 : vector<8x16xi1>
    %cst_10 = arith.constant dense<0xFF800000> : vector<8xf32>
    %28 = vector.multi_reduction <maximumf>, %4, %cst_10 [1] : vector<8x16xf32> to vector<8xf32>
    %29 = vector.shape_cast %28 : vector<8xf32> to vector<8x1xf32>
    %30 = vector.broadcast %29 : vector<8x1xf32> to vector<8x16xf32>
    %31 = arith.subf %4, %30 : vector<8x16xf32>
    %32 = math.exp %31 : vector<8x16xf32>
    %cst_11 = arith.constant 0.000000e+00 : f32
    %33 = vector.broadcast %cst_11 : f32 to vector<8x16xf32>
    %34 = arith.select %12, %32, %33 : vector<8x16xi1>, vector<8x16xf32>
    %cst_12 = arith.constant dense<0.000000e+00> : vector<8xf32>
    %35 = vector.multi_reduction <add>, %34, %cst_12 [1] : vector<8x16xf32> to vector<8xf32>
    %36 = vector.shape_cast %35 : vector<8xf32> to vector<8x1xf32>
    %cst_13 = arith.constant 0.000000e+00 : f32
    %37 = vector.broadcast %cst_13 : f32 to vector<8x16xf32>
    %38 = arith.select %27, %31, %37 : vector<8x16xi1>, vector<8x16xf32>
    %cst_14 = arith.constant dense<0.000000e+00> : vector<8xf32>
    %39 = vector.multi_reduction <add>, %38, %cst_14 [1] : vector<8x16xf32> to vector<8xf32>
    %40 = vector.shape_cast %39 : vector<8xf32> to vector<8x1xf32>
    %cst_15 = arith.constant 1.000000e+00 : f32
    %cst_16 = arith.constant 0.000000e+00 : f32
    %41 = vector.broadcast %cst_15 : f32 to vector<8x16xf32>
    %42 = vector.broadcast %cst_16 : f32 to vector<8x16xf32>
    %43 = arith.select %27, %41, %42 : vector<8x16xi1>, vector<8x16xf32>
    %cst_17 = arith.constant dense<0.000000e+00> : vector<8xf32>
    %44 = vector.multi_reduction <add>, %43, %cst_17 [1] : vector<8x16xf32> to vector<8xf32>
    %45 = vector.shape_cast %44 : vector<8xf32> to vector<8x1xf32>
    %46 = arith.divf %40, %45 : vector<8x1xf32>
    %47 = math.log %36 : vector<8x1xf32>
    %48 = arith.subf %46, %47 : vector<8x1xf32>
    %cst_18 = arith.constant 0.000000e+00 : f32
    %49 = vector.broadcast %cst_18 : f32 to vector<8x1xf32>
    %50 = arith.subf %49, %48 : vector<8x1xf32>
    %c0_19 = arith.constant 0 : index
    %c0_20 = arith.constant 0 : index
    %51 = vector.load %arg5[%c0_19, %c0_20] : memref<8x1xf32, #tpu.memory_space<vmem>>, vector<8x1xf32>
    tpu.vector_store %arg5[%c0_19, %c0_20], %50 {strides = array<i32>} : memref<8x1xf32, #tpu.memory_space<vmem>>, vector<8x1xf32>,
    return
  }
  func.func @transform_0(%arg0: i32) -> (i32, i32) {
    %c0_i32 = arith.constant 0 : i32
    %c0_i32_0 = arith.constant 0 : i32
    return %arg0, %c0_i32 : i32, i32
  }
  func.func @transform_1(%arg0: i32) -> (i32, i32) {
    %c0_i32 = arith.constant 0 : i32
    %c0_i32_0 = arith.constant 0 : i32
    %c0_i32_1 = arith.constant 0 : i32
    return %c0_i32, %c0_i32_0 : i32, i32
  }
  func.func @transform_2(%arg0: i32) -> (i32, i32) {
    %c0_i32 = arith.constant 0 : i32
    %c0_i32_0 = arith.constant 0 : i32
    return %arg0, %c0_i32 : i32, i32
  }
  func.func @transform_3(%arg0: i32) -> (i32, i32) {
    %c0_i32 = arith.constant 0 : i32
    %c0_i32_0 = arith.constant 0 : i32
    %c0_i32_1 = arith.constant 0 : i32
    return %c0_i32, %c0_i32_0 : i32, i32
  }
  func.func @transform_4(%arg0: i32) -> (i32, i32) {
    %c0_i32 = arith.constant 0 : i32
    %c0_i32_0 = arith.constant 0 : i32
    return %arg0, %c0_i32 : i32, i32
  }
}

module attributes {stable_mosaic.version = 11 : i64} {
  func.func @_supcon_kernel(%arg0: i32, %arg1: memref<8x128xf32, #tpu.memory_space<vmem>>, %arg2: memref<128x16xf32, #tpu.memory_space<vmem>>, %arg3: memref<8x1xi32, #tpu.memory_space<vmem>>, %arg4: memref<1x16xi32, #tpu.memory_space<vmem>>, %arg5: memref<8x1xf32, #tpu.memory_space<vmem>>) attributes {dimension_semantics = [#tpu.dimension_semantics<parallel>], iteration_bounds = array<i64: 2>, scalar_prefetch = 0 : i64, scratch_operands = 0 : i64, tpu.core_type = #tpu.core_type<tc>, window_params = [{transform_indices = @transform_0, window_bounds = array<i64: 8, 128>}, {pipeline_mode = #tpu.pipeline_mode<synchronous>, transform_indices = @transform_1, window_bounds = array<i64: 128, 16>}, {transform_indices = @transform_2, window_bounds = array<i64: 8, 1>}, {pipeline_mode = #tpu.pipeline_mode<synchronous>, transform_indices = @transform_3, window_bounds = array<i64: 1, 16>}, {transform_indices = @transform_4, window_bounds = array<i64: 8, 1>}]} {
    %c0 = arith.constant 0 : index
    %c0_0 = arith.constant 0 : index
    %0 = vector.load %arg1[%c0, %c0_0] : memref<8x128xf32, #tpu.memory_space<vmem>>, vector<8x128xf32>
    %cst = arith.constant 14.2857141 : f32
    %1 = vector.broadcast %cst : f32 to vector<8x128xf32>
    %2 = arith.mulf %0, %1 : vector<8x128xf32>
    %c0_1 = arith.constant 0 : index
    %c0_2 = arith.constant 0 : index
    %3 = vector.load %arg2[%c0_1, %c0_2] : memref<128x16xf32, #tpu.memory_space<vmem>>, vector<128x16xf32>
    %cst_3 = arith.constant dense<0.000000e+00> : vector<8x16xf32>
    %4 = tpu.matmul %2, %3, %cst_3 {dimension_numbers = #tpu.dot_dimension_numbers<[1], [0], [0], [1], [0, 0, 1, 1], [], []>} : vector<8x128xf32>, vector<128x16xf32>, vector<8x16xf32> -> vector<8x16xf32>
    %5 = tpu.iota {dimensions = array<i32: 0>} : vector<8x1xi32>
    %c8_i32 = arith.constant 8 : i32
    %6 = arith.muli %arg0, %c8_i32 : i32
    %7 = vector.broadcast %6 : i32 to vector<8x1xi32>
    %8 = arith.addi %5, %7 : vector<8x1xi32>
    %9 = tpu.iota {dimensions = array<i32: 1>} : vector<1x16xi32>
    %10 = vector.broadcast %8 : vector<8x1xi32> to vector<8x16xi32>
    %11 = vector.broadcast %9 : vector<1x16xi32> to vector<8x16xi32>
    %12 = arith.cmpi ne, %10, %11 : vector<8x16xi32>
    %c8_i32_4 = arith.constant 8 : i32
    %13 = vector.broadcast %c8_i32_4 : i32 to vector<8x1xi32>
    %14 = arith.cmpi slt, %8, %13 : vector<8x1xi32>
    %c8_i32_5 = arith.constant 8 : i32
    %15 = vector.broadcast %c8_i32_5 : i32 to vector<1x16xi32>
    %16 = arith.cmpi slt, %9, %15 : vector<1x16xi32>
    %17 = vector.broadcast %14 : vector<8x1xi1> to vector<8x16xi1>
    %18 = vector.broadcast %16 : vector<1x16xi1> to vector<8x16xi1>
    %19 = vector.broadcast %17 : vector<8x16xi1> to vector<8x16xi1>
    %20 = vector.broadcast %18 : vector<8x16xi1> to vector<8x16xi1>
    %21 = arith.xori %19, %20 : vector<8x16xi1>
    %c0_6 = arith.constant 0 : index
    %c0_7 = arith.constant 0 : index
    %22 = vector.load %arg3[%c0_6, %c0_7] : memref<8x1xi32, #tpu.memory_space<vmem>>, vector<8x1xi32>
    %c0_8 = arith.constant 0 : index
    %c0_9 = arith.constant 0 : index
    %23 = vector.load %arg4[%c0_8, %c0_9] : memref<1x16xi32, #tpu.memory_space<vmem>>, vector<1x16xi32>
    %24 = vector.broadcast %22 : vector<8x1xi32> to vector<8x16xi32>
    %25 = vector.broadcast %23 : vector<1x16xi32> to vector<8x16xi32>
    %26 = arith.cmpi eq, %24, %25 : vector<8x16xi32>
    %27 = arith.andi %26, %21 : vector<8x16xi1>
    %cst_10 = arith.constant dense<0xFF800000> : vector<8xf32>
    %28 = vector.multi_reduction <maximumf>, %4, %cst_10 [1] : vector<8x16xf32> to vector<8xf32>
    %29 = vector.shape_cast %28 : vector<8xf32> to vector<8x1xf32>
    %30 = vector.broadcast %29 : vector<8x1xf32> to vector<8x16xf32>
    %31 = arith.subf %4, %30 : vector<8x16xf32>
    %32 = math.exp %31 : vector<8x16xf32>
    %cst_11 = arith.constant 0.000000e+00 : f32
    %33 = vector.broadcast %cst_11 : f32 to vector<8x16xf32>
    %34 = arith.select %12, %32, %33 : vector<8x16xi1>, vector<8x16xf32>
    %cst_12 = arith.constant dense<0.000000e+00> : vector<8xf32>
    %35 = vector.multi_reduction <add>, %34, %cst_12 [1] : vector<8x16xf32> to vector<8xf32>
    %36 = vector.shape_cast %35 : vector<8xf32> to vector<8x1xf32>
    %cst_13 = arith.constant 0.000000e+00 : f32
    %37 = vector.broadcast %cst_13 : f32 to vector<8x16xf32>
    %38 = arith.select %27, %31, %37 : vector<8x16xi1>, vector<8x16xf32>
    %cst_14 = arith.constant dense<0.000000e+00> : vector<8xf32>
    %39 = vector.multi_reduction <add>, %38, %cst_14 [1] : vector<8x16xf32> to vector<8xf32>
    %40 = vector.shape_cast %39 : vector<8xf32> to vector<8x1xf32>
    %cst_15 = arith.constant 1.000000e+00 : f32
    %cst_16 = arith.constant 0.000000e+00 : f32
    %41 = vector.broadcast %cst_15 : f32 to vector<8x16xf32>
    %42 = vector.broadcast %cst_16 : f32 to vector<8x16xf32>
    %43 = arith.select %27, %41, %42 : vector<8x16xi1>, vector<8x16xf32>
    %cst_17 = arith.constant dense<0.000000e+00> : vector<8xf32>
    %44 = vector.multi_reduction <add>, %43, %cst_17 [1] : vector<8x16xf32> to vector<8xf32>
    %45 = vector.shape_cast %44 : vector<8xf32> to vector<8x1xf32>
    %46 = arith.divf %40, %45 : vector<8x1xf32>
    %47 = math.log %36 : vector<8x1xf32>
    %48 = arith.subf %46, %47 : vector<8x1xf32>
    %cst_18 = arith.constant 0.000000e+00 : f32
    %49 = vector.broadcast %cst_18 : f32 to vector<8x1xf32>
    %50 = arith.subf %49, %48 : vector<8x1xf32>
    %c0_19 = arith.constant 0 : index
    %c0_20 = arith.constant 0 : index
    %51 = vector.load %arg5[%c0_19, %c0_20] : memref<8x1xf32, #tpu.memory_space<vmem>>, vector<8x1xf32>
    tpu.vector_store %arg5[%c0_19, %c0_20], %50 {strides = array<i32>} : memref<8x1xf32, #tpu.memory_space<vmem>>, vector<8x1xf32>,
    return
  }
  func.func @transform_0(%arg0: i32) -> (i32, i32) {
    %c0_i32 = arith.constant 0 : i32
    %c0_i32_0 = arith.constant 0 : i32
    return %arg0, %c0_i32 : i32, i32
  }
  func.func @transform_1(%arg0: i32) -> (i32, i32) {
    %c0_i32 = arith.constant 0 : i32
    %c0_i32_0 = arith.constant 0 : i32
    %c0_i32_1 = arith.constant 0 : i32
    return %c0_i32, %c0_i32_0 : i32, i32
  }
  func.func @transform_2(%arg0: i32) -> (i32, i32) {
    %c0_i32 = arith.constant 0 : i32
    %c0_i32_0 = arith.constant 0 : i32
    return %arg0, %c0_i32 : i32, i32
  }
  func.func @transform_3(%arg0: i32) -> (i32, i32) {
    %c0_i32 = arith.constant 0 : i32
    %c0_i32_0 = arith.constant 0 : i32
    %c0_i32_1 = arith.constant 0 : i32
    return %c0_i32, %c0_i32_0 : i32, i32
  }
  func.func @transform_4(%arg0: i32) -> (i32, i32) {
    %c0_i32 = arith.constant 0 : i32
    %c0_i32_0 = arith.constant 0 : i32
    return %arg0, %c0_i32 : i32, i32
  }
}

</mosaic_0001>

<bundles_post_ra>
// kernel: tpu_custom_call.1
= control target key start
LH: loop header
LB: loop body
LE: loop exit
PB: predicated region body
PF: predicated region fallthrough
CT: control target
= control target key end

     0   :  { %s560_s15 = smov 0   ;;  %s647_s0 = inlined_call_operand.vmem [shape: f32[16,128], index: 0, kind: input, shape index: {}]   ;;  %s648_s1 = inlined_call_operand.vmem [shape: f32[128,16], index: 1, kind: input, shape index: {}]   ;;  %s649_s2 = inlined_call_operand.vmem [shape: s32[16,1], index: 2, kind: input, shape index: {}]   ;;  %s650_s3 = inlined_call_operand.vmem [shape: s32[1,16], index: 3, kind: input, shape index: {}]   ;;  %s651_s4 = inlined_call_operand.vmem [shape: f32[16,1], index: 4, kind: output, shape index: {}]  }
   0x1 LB: > { %s566_s16 = sadd.s32 4294967295, %s529_s15   ;;  %p420_p0 = scmp.ge.s32.totalorder %s529_s15, 1  ;;  %s529_s15 = sphi %s560_s15, %s14_s15  }
   0x2   : > { %p170_p1 = scmp.lt.s32.totalorder %s529_s15, 3 }
   0x4   : > { %p171_p2 = pnand %p420_p0, %p170_p1 }
   0x5   : > { %v212_v0 = vld [vmem:[%s648_s1] sm:$0xff] (!%p171_p2)  ;;  %v213_v1 = vld [vmem:[%s648_s1 + $0x8] sm:$0xff] (!%p171_p2)  ;;  %v214_v2 = vld [vmem:[%s648_s1 + $0x10] sm:$0xff] (!%p171_p2)  ;;  %v531_v3 = vmov (!%p171_p2), 0.0|0.0   ;;  %vm532_vm0 = vmmov (!%p171_p2), 0   ;;  %v533_v6 = vmov (!%p171_p2), 0.0   ;;  %v298_v33 = vlaneseq (!%p171_p2) }
   0x6   : > { %174 = sbr.rel (%p171_p2) target bundleno = 575 (0x23f), region = 36  ;;  %480 = vmatprep.subr.bf16.mxu0 (!%p171_p2), %v531_v3  ;;  %v481_v4 = vpack.c.bf16 (!%p171_p2), %v213_v1, %v212_v0  ;;  %v215_v5 = vld [vmem:[%s648_s1 + $0x18] sm:$0xff] (!%p171_p2)  ;;  %477 = vmatprep.mubr.msk.f32.mxu0 (!%p171_p2), %vm532_vm0, %v533_v6  ;;  %v216_v8 = vld [vmem:[%s648_s1 + $0x20] sm:$0xff] (!%p171_p2)  ;;  %v217_v9 = vld [vmem:[%s648_s1 + $0x28] sm:$0xff] (!%p171_p2)  ;;  %p198_p3 = scmp.lt.s32.totalorder (!%p171_p2), %s566_s16, 1  ;;  %v534_v28 = vmov (!%p171_p2), 0  }
   0x7   : > { %v484_v7 = vpack.c.bf16 (!%p171_p2), %v215_v5, %v214_v2  ;;  %v487_v10 = vpack.c.bf16 (!%p171_p2), %v217_v9, %v216_v8  ;;  %v218_v11 = vld [vmem:[%s648_s1 + $0x30] sm:$0xff] (!%p171_p2)  ;;  %v219_v12 = vld [vmem:[%s648_s1 + $0x38] sm:$0xff] (!%p171_p2)  ;;  %v220_v14 = vld [vmem:[%s648_s1 + $0x40] sm:$0xff] (!%p171_p2)  ;;  %516 = vset.pattern.permute.xlu0 (!%p171_p2), %v534_v28  ;;  %vm324_vm1 = vcmask (!%p171_p2), 130048   ;;  %s424_s7 = sshll.u32 (!%p171_p2), %s566_s16, 3  ;;  %v299_v36 = vshrl.u32 (!%p171_p2), %v298_v33, 7 }
   0x8   : > { %482 = vmatpush3.bf16.msra.mxu0 (!%p171_p2), %v481_v4  ;;  %v490_v13 = vpack.c.bf16 (!%p171_p2), %v219_v12, %v218_v11  ;;  %v221_v15 = vld [vmem:[%s648_s1 + $0x48] sm:$0xff] (!%p171_p2)  ;;  %v222_v17 = vld [vmem:[%s648_s1 + $0x50] sm:$0xff] (!%p171_p2)  ;;  %v223_v18 = vld [vmem:[%s648_s1 + $0x58] sm:$0xff] (!%p171_p2)  ;;  %v301_v37 = vstv (!%p171_p2), %s424_s7  ;;  %v304_v40 = vand.u32 (!%p171_p2), 127, %v298_v33  ;;  %vm349_vm8 = vcmask (!%p171_p2), 7168  }
   0x9   : > { %483 = vmatprep.subr.bf16.mxu0 (!%p171_p2), %v531_v3  ;;  %v493_v16 = vpack.c.bf16 (!%p171_p2), %v221_v15, %v220_v14  ;;  %v496_v19 = vpack.c.bf16 (!%p171_p2), %v223_v18, %v222_v17  ;;  %v224_v20 = vld [vmem:[%s648_s1 + $0x60] sm:$0xff] (!%p171_p2)  ;;  %v225_v21 = vld [vmem:[%s648_s1 + $0x68] sm:$0xff] (!%p171_p2)  ;;  %v226_v23 = vld [vmem:[%s648_s1 + $0x70] sm:$0xff] (!%p171_p2)  ;;  %v302_v39 = vadd.s32 (!%p171_p2), %v301_v37, %v299_v36 }
   0xa   : > { %v499_v22 = vpack.c.bf16 (!%p171_p2), %v225_v21, %v224_v20  ;;  %v227_v24 = vld [vmem:[%s648_s1 + $0x78] sm:$0xff] (!%p171_p2)  ;;  %vm307_vm3 = vcmp.lt.s32.totalorder (!%p171_p2), %v304_v40, 8  ;;  %v425_v41 = vld [vmem:[%s650_s3] ss:$0 sm:$0xff] (!%p171_p2) }
   0xb   : > { %v502_v25 = vpack.c.bf16 (!%p171_p2), %v227_v24, %v226_v23  ;;  %vm306_vm2 = vcmp.lt.s32.totalorder (!%p171_p2), %v302_v39, 8  ;;  %vm305_vm6 = vcmp.ne.s32.totalorder (!%p171_p2), %v302_v39, %v304_v40 }
   0xc   : > { %485 = vmatpush3.bf16.msra.mxu0 (!%p171_p2), %v484_v7  ;;  %vm312_vm4 = vmxor (!%p171_p2), %vm306_vm2, %vm307_vm3 }
   0xd   : > { %486 = vmatprep.subr.bf16.mxu0 %v531_v3  ;;  %s199_s17 = scalar_select %p198_p3, %s566_s16, 1 }
   0xf   : > { %s615_s22 = sshll.u32 %s199_s17, 3 }
  0x10   : > { %488 = vmatpush3.bf16.msra.mxu0 %v487_v10  ;;  %s201_s29 = scalar_lea.vmem %s647_s0, %s615_s22  ;;  %s205_s6 = scalar_lea.vmem %s649_s2, %s615_s22 }
  0x11   : > { %489 = vmatprep.subr.bf16.mxu0 %v531_v3  ;;  %v210_v26 = vld [vmem:[%s201_s29] sm:$0xff]  ;;  %s209_s11 = scalar_lea.vmem %s651_s4, %s615_s22 }
  0x12   : > { %v211_v27 = vmul.f32 14.285714, %v210_v26  ;;  %v313_v32 = vld [vmem:[%s205_s6] sm:$0xff] }
  0x14   : > { %491 = vmatpush3.bf16.msra.mxu0 %v490_v13 }
  0x15   : > { %492 = vmatprep.subr.bf16.mxu0 %v531_v3 }
  0x18   : > { %494 = vmatpush3.bf16.msra.mxu0 %v493_v16 }
  0x19   : > { %495 = vmatprep.subr.bf16.mxu0 %v531_v3 }
  0x1c   : > { %497 = vmatpush3.bf16.msra.mxu0 %v496_v19 }
  0x1d   : > { %498 = vmatprep.subr.bf16.mxu0 %v531_v3 }
  0x20   : > { %500 = vmatpush3.bf16.msra.mxu0 %v499_v22 }
  0x21   : > { %501 = vmatprep.subr.bf16.mxu0 %v531_v3 }
  0x24   : > { %503 = vmatpush3.bf16.msra.mxu0 %v502_v25 }
  0x27   : > { %478 = vmatmul.mubr.f32.vlgmr.msra.gmra.mrb[0].mxu0 %v211_v27 }
  0xfa   : > { %v294_v29 = vpop.f32.mrb[0].mxu0 }
  0xfb   : > { %v479_v30 = vpop.f32.mrb[1].mxu0  ;;  %v325_v31 = vsel %vm324_vm1, %v294_v29, -inf }
  0xfc   : > { %326 = vmax.xlane.f32.xlu0 %v325_v31 }
 0x112   : > { %316 = vperm.xlu0 %516, %v313_v32  }
 0x189   : > { %v327_v34 = vpop.xlane.xlu0 %326 }
 0x18a   : > { %v328_v35 = vsub.f32 %v294_v29, %v327_v34 }
 0x18c   : > { %v329_v38 = vmul.f32 1.442695, %v328_v35 }
 0x18e   : > { %517 = vpow2.f32 %v329_v38 }
 0x191   : > { %v317_v42 = vpop.permute.xlu0 %316 }
 0x192   : > { %vm322_vm5 = vcmp.eq.s32.totalorder %v317_v42, %v425_v41 }
 0x193   : > { %vm323_vm7 = vmand %vm322_vm5, %vm312_vm4 }
 0x194   : > { %v339_v45 = vsel %vm323_vm7, 1.0, %v533_v6  ;;  %v335_v48 = vsel %vm323_vm7, %v328_v35, 0.0 }
 0x195   : > { %v340_v47 = vsel %vm324_vm1, %v339_v45, 0.0  ;;  %v336_v49 = vsel %vm324_vm1, %v335_v48, 0.0 }
 0x198   : > { %v518_v43 = vpop.eup %517 }
 0x199   : > { %v331_v44 = vsel %vm305_vm6, %v518_v43, 0.0 }
 0x19a   : > { %v332_v46 = vsel %vm324_vm1, %v331_v44, 0.0 }
 0x19b   : > { %333 = vadd.xlane.f32.xlu1 %v332_v46 }
 0x19f   : > { %341 = vadd.xlane.f32.xlu1 %v340_v47 }
 0x1a3   : > { %337 = vadd.xlane.f32.xlu1 %v336_v49 }
 0x228   : > { %v334_v50 = vpop.xlane.xlu1 %333 }
 0x229   : > { %519 = vlog2.f32 %v334_v50 }
 0x22c   : > { %v342_v51 = vpop.xlane.xlu1 %341 }
 0x22d   : > { %521 = vrcp.f32 %v342_v51 }
 0x230   : > { %v338_v54 = vpop.xlane.xlu1 %337 }
 0x233   : > { %v520_v52 = vpop.eup %519 }
 0x234   : > { %v346_v55 = vmul.f32 0.6931472, %v520_v52 }
 0x237   : > { %v522_v53 = vpop.eup %521 }
 0x238   : > { %v344_v56 = vmul.f32 %v522_v53, %v338_v54 }
 0x23a   : > { %v347_v57 = vsub.f32 %v344_v56, %v346_v55 }
 0x23c   : > { %v348_v58 = vsub.f32 0.0, %v347_v57 }
 0x23e   : > { %350 = vst.msk [vmem:[%s209_s11] sm:$0xff] %vm349_vm8, %v348_v58 }
 0x23f PF: > { %s14_s15 = sadd.s32 1, %s529_s15  }
 0x240   : > { %p11_p4 = scmp.ge.s32.totalorder %s14_s15, 4  }
 0x242   :  { %13 = sbr.rel (!%p11_p4) target bundleno = 1 (0x1), region = 69 }

// kernel: tpu_custom_call.1
= control target key start
LH: loop header
LB: loop body
LE: loop exit
PB: predicated region body
PF: predicated region fallthrough
CT: control target
= control target key end

     0   :  { %s560_s15 = smov 0   ;;  %s647_s0 = inlined_call_operand.vmem [shape: f32[16,128], index: 0, kind: input, shape index: {}]   ;;  %s648_s1 = inlined_call_operand.vmem [shape: f32[128,16], index: 1, kind: input, shape index: {}]   ;;  %s649_s2 = inlined_call_operand.vmem [shape: s32[16,1], index: 2, kind: input, shape index: {}]   ;;  %s650_s3 = inlined_call_operand.vmem [shape: s32[1,16], index: 3, kind: input, shape index: {}]   ;;  %s651_s4 = inlined_call_operand.vmem [shape: f32[16,1], index: 4, kind: output, shape index: {}]  }
   0x1 LB: > { %s566_s16 = sadd.s32 4294967295, %s529_s15   ;;  %p420_p0 = scmp.ge.s32.totalorder %s529_s15, 1  ;;  %s529_s15 = sphi %s560_s15, %s14_s15  }
   0x2   : > { %p170_p1 = scmp.lt.s32.totalorder %s529_s15, 3 }
   0x4   : > { %p171_p2 = pnand %p420_p0, %p170_p1 }
   0x5   : > { %v212_v0 = vld [vmem:[%s648_s1] sm:$0xff] (!%p171_p2)  ;;  %v213_v1 = vld [vmem:[%s648_s1 + $0x8] sm:$0xff] (!%p171_p2)  ;;  %v214_v2 = vld [vmem:[%s648_s1 + $0x10] sm:$0xff] (!%p171_p2)  ;;  %v531_v3 = vmov (!%p171_p2), 0.0|0.0   ;;  %vm532_vm0 = vmmov (!%p171_p2), 0   ;;  %v533_v6 = vmov (!%p171_p2), 0.0   ;;  %v298_v33 = vlaneseq (!%p171_p2) }
   0x6   : > { %174 = sbr.rel (%p171_p2) target bundleno = 575 (0x23f), region = 36  ;;  %480 = vmatprep.subr.bf16.mxu0 (!%p171_p2), %v531_v3  ;;  %v481_v4 = vpack.c.bf16 (!%p171_p2), %v213_v1, %v212_v0  ;;  %v215_v5 = vld [vmem:[%s648_s1 + $0x18] sm:$0xff] (!%p171_p2)  ;;  %477 = vmatprep.mubr.msk.f32.mxu0 (!%p171_p2), %vm532_vm0, %v533_v6  ;;  %v216_v8 = vld [vmem:[%s648_s1 + $0x20] sm:$0xff] (!%p171_p2)  ;;  %v217_v9 = vld [vmem:[%s648_s1 + $0x28] sm:$0xff] (!%p171_p2)  ;;  %p198_p3 = scmp.lt.s32.totalorder (!%p171_p2), %s566_s16, 1  ;;  %v534_v28 = vmov (!%p171_p2), 0  }
   0x7   : > { %v484_v7 = vpack.c.bf16 (!%p171_p2), %v215_v5, %v214_v2  ;;  %v487_v10 = vpack.c.bf16 (!%p171_p2), %v217_v9, %v216_v8  ;;  %v218_v11 = vld [vmem:[%s648_s1 + $0x30] sm:$0xff] (!%p171_p2)  ;;  %v219_v12 = vld [vmem:[%s648_s1 + $0x38] sm:$0xff] (!%p171_p2)  ;;  %v220_v14 = vld [vmem:[%s648_s1 + $0x40] sm:$0xff] (!%p171_p2)  ;;  %516 = vset.pattern.permute.xlu0 (!%p171_p2), %v534_v28  ;;  %vm324_vm1 = vcmask (!%p171_p2), 130048   ;;  %s424_s7 = sshll.u32 (!%p171_p2), %s566_s16, 3  ;;  %v299_v36 = vshrl.u32 (!%p171_p2), %v298_v33, 7 }
   0x8   : > { %482 = vmatpush3.bf16.msra.mxu0 (!%p171_p2), %v481_v4  ;;  %v490_v13 = vpack.c.bf16 (!%p171_p2), %v219_v12, %v218_v11  ;;  %v221_v15 = vld [vmem:[%s648_s1 + $0x48] sm:$0xff] (!%p171_p2)  ;;  %v222_v17 = vld [vmem:[%s648_s1 + $0x50] sm:$0xff] (!%p171_p2)  ;;  %v223_v18 = vld [vmem:[%s648_s1 + $0x58] sm:$0xff] (!%p171_p2)  ;;  %v301_v37 = vstv (!%p171_p2), %s424_s7  ;;  %v304_v40 = vand.u32 (!%p171_p2), 127, %v298_v33  ;;  %vm349_vm8 = vcmask (!%p171_p2), 7168  }
   0x9   : > { %483 = vmatprep.subr.bf16.mxu0 (!%p171_p2), %v531_v3  ;;  %v493_v16 = vpack.c.bf16 (!%p171_p2), %v221_v15, %v220_v14  ;;  %v496_v19 = vpack.c.bf16 (!%p171_p2), %v223_v18, %v222_v17  ;;  %v224_v20 = vld [vmem:[%s648_s1 + $0x60] sm:$0xff] (!%p171_p2)  ;;  %v225_v21 = vld [vmem:[%s648_s1 + $0x68] sm:$0xff] (!%p171_p2)  ;;  %v226_v23 = vld [vmem:[%s648_s1 + $0x70] sm:$0xff] (!%p171_p2)  ;;  %v302_v39 = vadd.s32 (!%p171_p2), %v301_v37, %v299_v36 }
   0xa   : > { %v499_v22 = vpack.c.bf16 (!%p171_p2), %v225_v21, %v224_v20  ;;  %v227_v24 = vld [vmem:[%s648_s1 + $0x78] sm:$0xff] (!%p171_p2)  ;;  %vm307_vm3 = vcmp.lt.s32.totalorder (!%p171_p2), %v304_v40, 8  ;;  %v425_v41 = vld [vmem:[%s650_s3] ss:$0 sm:$0xff] (!%p171_p2) }
   0xb   : > { %v502_v25 = vpack.c.bf16 (!%p171_p2), %v227_v24, %v226_v23  ;;  %vm306_vm2 = vcmp.lt.s32.totalorder (!%p171_p2), %v302_v39, 8  ;;  %vm305_vm6 = vcmp.ne.s32.totalorder (!%p171_p2), %v302_v39, %v304_v40 }
   0xc   : > { %485 = vmatpush3.bf16.msra.mxu0 (!%p171_p2), %v484_v7  ;;  %vm312_vm4 = vmxor (!%p171_p2), %vm306_vm2, %vm307_vm3 }
   0xd   : > { %486 = vmatprep.subr.bf16.mxu0 %v531_v3  ;;  %s199_s17 = scalar_select %p198_p3, %s566_s16, 1 }
   0xf   : > { %s615_s22 = sshll.u32 %s199_s17, 3 }
  0x10   : > { %488 = vmatpush3.bf16.msra.mxu0 %v487_v10  ;;  %s201_s29 = scalar_lea.vmem %s647_s0, %s615_s22  ;;  %s205_s6 = scalar_lea.vmem %s649_s2, %s615_s22 }
  0x11   : > { %489 = vmatprep.subr.bf16.mxu0 %v531_v3  ;;  %v210_v26 = vld [vmem:[%s201_s29] sm:$0xff]  ;;  %s209_s11 = scalar_lea.vmem %s651_s4, %s615_s22 }
  0x12   : > { %v211_v27 = vmul.f32 14.285714, %v210_v26  ;;  %v313_v32 = vld [vmem:[%s205_s6] sm:$0xff] }
  0x14   : > { %491 = vmatpush3.bf16.msra.mxu0 %v490_v13 }
  0x15   : > { %492 = vmatprep.subr.bf16.mxu0 %v531_v3 }
  0x18   : > { %494 = vmatpush3.bf16.msra.mxu0 %v493_v16 }
  0x19   : > { %495 = vmatprep.subr.bf16.mxu0 %v531_v3 }
  0x1c   : > { %497 = vmatpush3.bf16.msra.mxu0 %v496_v19 }
  0x1d   : > { %498 = vmatprep.subr.bf16.mxu0 %v531_v3 }
  0x20   : > { %500 = vmatpush3.bf16.msra.mxu0 %v499_v22 }
  0x21   : > { %501 = vmatprep.subr.bf16.mxu0 %v531_v3 }
  0x24   : > { %503 = vmatpush3.bf16.msra.mxu0 %v502_v25 }
  0x27   : > { %478 = vmatmul.mubr.f32.vlgmr.msra.gmra.mrb[0].mxu0 %v211_v27 }
  0xfa   : > { %v294_v29 = vpop.f32.mrb[0].mxu0 }
  0xfb   : > { %v479_v30 = vpop.f32.mrb[1].mxu0  ;;  %v325_v31 = vsel %vm324_vm1, %v294_v29, -inf }
  0xfc   : > { %326 = vmax.xlane.f32.xlu0 %v325_v31 }
 0x112   : > { %316 = vperm.xlu0 %516, %v313_v32  }
 0x189   : > { %v327_v34 = vpop.xlane.xlu0 %326 }
 0x18a   : > { %v328_v35 = vsub.f32 %v294_v29, %v327_v34 }
 0x18c   : > { %v329_v38 = vmul.f32 1.442695, %v328_v35 }
 0x18e   : > { %517 = vpow2.f32 %v329_v38 }
 0x191   : > { %v317_v42 = vpop.permute.xlu0 %316 }
 0x192   : > { %vm322_vm5 = vcmp.eq.s32.totalorder %v317_v42, %v425_v41 }
 0x193   : > { %vm323_vm7 = vmand %vm322_vm5, %vm312_vm4 }
 0x194   : > { %v339_v45 = vsel %vm323_vm7, 1.0, %v533_v6  ;;  %v335_v48 = vsel %vm323_vm7, %v328_v35, 0.0 }
 0x195   : > { %v340_v47 = vsel %vm324_vm1, %v339_v45, 0.0  ;;  %v336_v49 = vsel %vm324_vm1, %v335_v48, 0.0 }
 0x198   : > { %v518_v43 = vpop.eup %517 }
 0x199   : > { %v331_v44 = vsel %vm305_vm6, %v518_v43, 0.0 }
 0x19a   : > { %v332_v46 = vsel %vm324_vm1, %v331_v44, 0.0 }
 0x19b   : > { %333 = vadd.xlane.f32.xlu1 %v332_v46 }
 0x19f   : > { %341 = vadd.xlane.f32.xlu1 %v340_v47 }
 0x1a3   : > { %337 = vadd.xlane.f32.xlu1 %v336_v49 }
 0x228   : > { %v334_v50 = vpop.xlane.xlu1 %333 }
 0x229   : > { %519 = vlog2.f32 %v334_v50 }
 0x22c   : > { %v342_v51 = vpop.xlane.xlu1 %341 }
 0x22d   : > { %521 = vrcp.f32 %v342_v51 }
 0x230   : > { %v338_v54 = vpop.xlane.xlu1 %337 }
 0x233   : > { %v520_v52 = vpop.eup %519 }
 0x234   : > { %v346_v55 = vmul.f32 0.6931472, %v520_v52 }
 0x237   : > { %v522_v53 = vpop.eup %521 }
 0x238   : > { %v344_v56 = vmul.f32 %v522_v53, %v338_v54 }
 0x23a   : > { %v347_v57 = vsub.f32 %v344_v56, %v346_v55 }
 0x23c   : > { %v348_v58 = vsub.f32 0.0, %v347_v57 }
 0x23e   : > { %350 = vst.msk [vmem:[%s209_s11] sm:$0xff] %vm349_vm8, %v348_v58 }
 0x23f PF: > { %s14_s15 = sadd.s32 1, %s529_s15  }
 0x240   : > { %p11_p4 = scmp.ge.s32.totalorder %s14_s15, 4  }
 0x242   :  { %13 = sbr.rel (!%p11_p4) target bundleno = 1 (0x1), region = 69 }

</bundles_post_ra>
